<compile_context>
chip_gen: v5e
topology: v5e:2x2
jax: 0.10.0
libtpu: 0.0.40
codegen_flags: <defaults>
</compile_context>

<pallas_src>
import jax
import jax.numpy as jnp
import numpy as np
from jax.experimental import pallas as pl
from jax.experimental.pallas import tpu as pltpu


# -----------------------------------------------------------------------------
# One-time probe: pin down pltpu.roll's shift direction (jnp.roll-like or the
# reverse) so the in-kernel im2col is correct regardless of JAX version.
# result[0,0] == 127  ->  jnp.roll semantics: out[i] = in[(i - shift) % n]
# -----------------------------------------------------------------------------
_ROLL_IS_JNP = None


def _roll_probe_kernel(x_ref, o_ref):
    o_ref[...] = pltpu.roll(x_ref[...], 1, axis=1)


def _roll_matches_jnp_roll() -> bool:
    global _ROLL_IS_JNP
    if _ROLL_IS_JNP is None:
        x = np.tile(np.arange(128, dtype=np.int32)[None, :], (8, 1))
        y = pl.pallas_call(
            _roll_probe_kernel,
            out_shape=jax.ShapeDtypeStruct((8, 128), jnp.int32),
        )(x)
        _ROLL_IS_JNP = int(np.asarray(y)[0, 0]) != 1
    return _ROLL_IS_JNP


# -----------------------------------------------------------------------------
# Kernel: in-kernel im2col (9 XLU rolls + border masks) -> single MXU GEMM ->
# f32 bias + sigmoid epilogue -> bf16 lane-dense output.
# -----------------------------------------------------------------------------
def _make_conv_kernel(H, W, Cin_p, Kp, HW, roll_is_jnp):
    K = 9 * Cin_p
    w_is_pow2 = (W & (W - 1)) == 0

    def kernel(x_ref, w_ref, b_ref, o_ref, pT_ref):
        # x_ref : (Cin_p, HW)  bf16  -- flattened NCHW plane of one batch element
        # w_ref : (Cout, Kp)   bf16  -- tap-major weight matrix, zero padded, resident
        # b_ref : (Cout, 1)    f32   -- bias (added in the epilogue, full f32 accuracy)
        # o_ref : (Cout, HW)   bf16  -- lane-dense flattened-NCHW output plane
        # pT_ref: (Kp, HW)     bf16  -- VMEM scratch holding the transposed patches
        x = x_ref[...]

        # Border masks from the flattened spatial index (hoisted out of the tap loop).
        pos = jax.lax.broadcasted_iota(jnp.int32, (Cin_p, HW), 1)
        if w_is_pow2:
            hh = pos >> (W.bit_length() - 1)
            ww = pos & (W - 1)
        else:  # generic fallback (not hit by the test shape)
            hh = pos // W
            ww = pos % W
        row_ok = {0: hh >= 1, 1: None, 2: hh <= H - 2}
        col_ok = {0: ww >= 1, 1: None, 2: ww <= W - 2}
        zero = jnp.zeros((Cin_p, HW), dtype=x.dtype)

        # In-kernel im2col: one XLU roll (+ VPU mask) per tap, stored into P^T.
        for kh in range(3):
            for kw in range(3):
                tap = kh * 3 + kw
                delta = (kh - 1) * W + (kw - 1)          # flat source offset of tap
                if delta == 0:
                    val = x
                else:
                    shift = (-delta) % HW if roll_is_jnp else delta % HW
                    val = pltpu.roll(x, shift, axis=1)
                mask = row_ok[kh]
                if col_ok[kw] is not None:
                    mask = col_ok[kw] if mask is None else (mask & col_ok[kw])
                if mask is not None:
                    val = jnp.where(mask, val, zero)
                pT_ref[pl.ds(tap * Cin_p, Cin_p), :] = val

        if Kp > K:  # zero the 128-padding tail (its weight columns are zero too)
            pT_ref[pl.ds(K, Kp - K), :] = jnp.zeros((Kp - K, HW), dtype=x.dtype)

        # Single full-width MXU GEMM with f32 accumulation, then f32 bias + sigmoid.
        acc = jnp.dot(w_ref[...], pT_ref[...], preferred_element_type=jnp.float32)
        o_ref[...] = jax.nn.sigmoid(acc + b_ref[...]).astype(o_ref.dtype)

    return kernel


def conv3x3_sigmoid_pallas(x_nchw, w_oihw, b):
    """3x3 'same' conv + sigmoid.  x: (N,Cin,H,W), w: (Cout,Cin,3,3), b: (Cout,)."""
    N, Cin, H, W = x_nchw.shape
    Cout = w_oihw.shape[0]
    HW = H * W
    PACK = 16                                    # bf16 sublane packing
    Cin_p = ((Cin + PACK - 1) // PACK) * PACK    # aligned per-tap channel block
    K = 9 * Cin_p
    Kp = ((K + 127) // 128) * 128                # full-width MXU contraction

    # ---- layout pass: cast to bf16 FIRST, then a tiny channel pad + reshape --------
    x = x_nchw.astype(jnp.bfloat16)
    if Cin_p != Cin:
        x = jnp.pad(x, ((0, 0), (0, Cin_p - Cin), (0, 0), (0, 0)))
    x = x.reshape(N, Cin_p, HW)                  # flattened NCHW plane, pure reshape

    # Weight -> tap-major columns: col = (kh*3 + kw) * Cin_p + c  (matches the scratch).
    w = jnp.transpose(w_oihw.astype(jnp.bfloat16), (0, 2, 3, 1))    # (Cout, 3, 3, Cin)
    if Cin_p != Cin:
        w = jnp.pad(w, ((0, 0), (0, 0), (0, 0), (0, Cin_p - Cin)))
    w_mat = w.reshape(Cout, K)
    if Kp != K:
        w_mat = jnp.pad(w_mat, ((0, 0), (0, Kp - K)))

    b_col = b.astype(jnp.float32).reshape(Cout, 1)   # f32 bias for the epilogue add

    kernel = _make_conv_kernel(H, W, Cin_p, Kp, HW, _roll_matches_jnp_roll())

    out = pl.pallas_call(
        kernel,
        out_shape=jax.ShapeDtypeStruct((N, Cout, HW), jnp.bfloat16),
        grid_spec=pltpu.PrefetchScalarGridSpec(
            num_scalar_prefetch=0,
            grid=(N,),                                            # one batch/step
            in_specs=[
                pl.BlockSpec((None, Cin_p, HW), lambda n: (n, 0, 0)),
                pl.BlockSpec((Cout, Kp), lambda n: (0, 0)),       # resident weight
                pl.BlockSpec((Cout, 1), lambda n: (0, 0)),        # resident bias
            ],
            out_specs=pl.BlockSpec((None, Cout, HW), lambda n: (n, 0, 0)),
            scratch_shapes=[pltpu.VMEM((Kp, HW), jnp.bfloat16)],
        ),
        compiler_params=pltpu.CompilerParams(
            dimension_semantics=("parallel",),      # both v7x TensorCores get work
            vmem_limit_bytes=32 * 1024 * 1024,
        ),
    )(x, w_mat, b_col)

    return out.reshape(N, Cout, H, W)               # NCHW, pure reshape (no transpose)


def model_forward(x1, x2, x3, x4, x5, x6, w_oihw, b):
    """Forward of the PyTorch Model: sigmoid(conv3x3(cat([x6,x4,x3,x2,x1], dim=1)))."""
    del x5                                          # unused, as in the reference module
    # Cast before the concat so every downstream layout op moves half the bytes.
    cat = jnp.concatenate(
        [t.astype(jnp.bfloat16) for t in (x6, x4, x3, x2, x1)], axis=1)
    return conv3x3_sigmoid_pallas(cat, w_oihw, b)


if __name__ == "__main__":
    # Resolve the roll-direction probe eagerly (outside any jit trace) and cache it.
    _roll_matches_jnp_roll()

    key = jax.random.PRNGKey(0)
    N, C_each, H, W = 2, 4, 16, 16
    Cin = 5 * C_each            # 20 channels after concat
    Cout = 32

    keys = jax.random.split(key, 8)
    xs = [jax.random.normal(keys[i], (N, C_each, H, W), dtype=jnp.float32)
          for i in range(6)]
    x1, x2, x3, x4, x5, x6 = xs

    # Deterministic parameter init (kaiming-uniform-like scale), PyTorch OIHW layout.
    fan_in = Cin * 3 * 3
    bound = 1.0 / np.sqrt(fan_in)
    w_oihw = jax.random.uniform(keys[6], (Cout, Cin, 3, 3),
                                minval=-bound, maxval=bound, dtype=jnp.float32)
    b = jax.random.uniform(keys[7], (Cout,), minval=-bound, maxval=bound,
                           dtype=jnp.float32)

    out = jax.block_until_ready(
        jax.jit(model_forward)(x1, x2, x3, x4, x5, x6, w_oihw, b))

    # Pure-JAX f32 reference (conv + bias + sigmoid) for sanity.
    cat = jnp.concatenate([x6, x4, x3, x2, x1], axis=1)
    ref = jax.lax.conv_general_dilated(
        cat, w_oihw, window_strides=(1, 1), padding=((1, 1), (1, 1)),
        dimension_numbers=("NCHW", "OIHW", "NCHW"))
    ref = jax.nn.sigmoid(ref + b.reshape(1, Cout, 1, 1))

    # bf16 MXU operands / bf16 output -> loosened tolerance vs the f32 reference.
    np.testing.assert_allclose(np.asarray(out.astype(jnp.float32)), np.asarray(ref),
                               rtol=2e-2, atol=2e-2)
    print("KERNEL_OK")
</pallas_src>

<mosaic_0001>
module attributes {stable_mosaic.version = 11 : i64} {
  func.func @_roll_probe_kernel(%arg0: memref<8x128xi32, #tpu.memory_space<vmem>>, %arg1: memref<8x128xi32, #tpu.memory_space<vmem>>) attributes {dimension_semantics = [], scalar_prefetch = 0 : i64, scratch_operands = 0 : i64, tpu.core_type = #tpu.core_type<tc>} {
    %c0 = arith.constant 0 : index
    %c0_0 = arith.constant 0 : index
    %0 = vector.load %arg0[%c0, %c0_0] : memref<8x128xi32, #tpu.memory_space<vmem>>, vector<8x128xi32>
    %c1_i32 = arith.constant 1 : i32
    %1 = tpu.dynamic_rotate %0 by %c1_i32 dim 1 : vector<8x128xi32>, i32 -> vector<8x128xi32>
    %c0_1 = arith.constant 0 : index
    %c0_2 = arith.constant 0 : index
    %2 = vector.load %arg1[%c0_1, %c0_2] : memref<8x128xi32, #tpu.memory_space<vmem>>, vector<8x128xi32>
    tpu.vector_store %arg1[%c0_1, %c0_2], %1 {strides = array<i32>} : memref<8x128xi32, #tpu.memory_space<vmem>>, vector<8x128xi32>,
    return
  }
}

</mosaic_0001>

<bundles_post_ra>
// kernel: tpu_custom_call.1
= control target key start
LH: loop header
LB: loop body
LE: loop exit
PB: predicated region body
PF: predicated region fallthrough
CT: control target
= control target key end

     0   :  { %6 = vsyncpa [#allocation3], 0  ;;  %s118_s0 = inlined_call_operand.hbm [shape: s32[8,128], index: 0, kind: input, shape index: {}]   ;;  %s119_s1 = inlined_call_operand.hbm [shape: s32[8,128], index: 1, kind: output, shape index: {}]  }
   0x1   :  { %7 = vsyncpa [#allocation4], 0  ;;  %s13_s8 = sshll.u32 %s118_s0, 4  ;;  %s99_s9 = smov [#allocation2]   ;;  %s14_s8 = int_to_ptr.hbm [resolvable:$true] %s13_s8 }
   0x2   :  { %s15_s10 = sshll.u32 %s99_s9, 4  ;;  %s16_s10 = int_to_ptr.vmem [resolvable:$true] %s15_s10 }
   0x3   :  { %18 = dma.hbm_to_vmem [thread:$0]  %s14_s8, 128, %s16_s10, [#allocation3]  }
   0x4   :  { %95 = dma.done.wait [#allocation3], 128  }
   0x5   :  { %96 = vsyncadd [#allocation3], 4294967168  ;;  %v23_v0 = vld [vmem:[#allocation2] sm:$0xff]  ;;  %s100_s11 = smov 1   ;;  %s101_s12 = smov [#allocation5]  }
   0x6   :  { %24 = vrot.lane.b32.xlu0 %v23_v0, %s100_s11  ;;  %s32_s13 = sshll.u32 %s101_s12, 4  ;;  %s34_s16 = sshll.u32 %s119_s1, 4  ;;  %s33_s13 = int_to_ptr.vmem [resolvable:$true] %s32_s13  ;;  %s35_s16 = int_to_ptr.hbm [resolvable:$true] %s34_s16 }
  0x78   :  { %v25_v1 = vpop.permute.xlu0 %24 }
  0x79   :  { %26 = vst [vmem:[#allocation5] sm:$0xff] %v25_v1 }
  0x7a   :  { %37 = dma.vmem_to_hbm [thread:$0]  %s33_s13, 128, %s35_s16, [#allocation4]  }
  0x7b   :  { %97 = dma.done.wait [#allocation4], 128  }
  0x7c   :  { %98 = vsyncadd [#allocation4], 4294967168 }
  0x7d   :  { %42 = vsyncpa [#allocation3], 1 }
  0x7e   :  { %43 = vsyncpa [#allocation4], 1 }

</bundles_post_ra>
